<compile_context>
chip_gen: v7x
topology: tpu7x:2x2x1
jax: 0.10.0
libtpu: 0.0.40
codegen_flags: <defaults>
</compile_context>

<pallas_src>
import functools

import jax
import jax.numpy as jnp
from jax.experimental import pallas as pl
from jax.experimental.pallas import tpu as pltpu

# Column order for the synthetic SDWPF raw features (last axis of `raw`).
COL_NAMES = {"Wspd": 0, "Wdir": 1, "Etmp": 2, "Itmp": 3, "Ndir": 4,
             "Pab1": 5, "Pab2": 6, "Pab3": 7, "Prtv": 8, "Patv": 9}


def _filter_loss_kernel(pred_ref, gold_ref, cond_ref, out_ref, *,
                        rows_valid, needs_mask):
    """pred/gold/cond tiles: (tm, LANE) lane-dense f32.

    Output: per-tile (1, 8, LANE) partial sums (grid axis is parallel).
    """
    tm, lane = pred_ref.shape

    diff = pred_ref[...] - gold_ref[...]
    # cond is exactly 0.0 / 1.0; multiplying keeps PyTorch's NaN propagation.
    val = (diff * diff + jnp.abs(diff)) * cond_ref[...]

    if needs_mask:
        # Ragged last block: rows past `rows_valid` hold unspecified data in
        # VMEM; force them to zero (where() is safe even against NaN/Inf).
        row_ids = jax.lax.broadcasted_iota(jnp.int32, (tm, lane), 0)
        global_rows = pl.program_id(0) * tm + row_ids
        val = jnp.where(global_rows < rows_valid, val, 0.0)

    # Collapse sublane groups only (vreg-aligned reshape -> pure VPU adds);
    # the final cross-lane reduction happens once in the wrapper.
    partial = val.reshape(tm // 8, 8, lane).sum(axis=0)   # (8, lane)
    out_ref[...] = partial.reshape(1, 8, lane)


def _compute_cond(raw, col_names):
    """Filter condition as a single fused elementwise pass over `raw`."""
    patv = raw[..., col_names["Patv"]]
    bad = patv < 0
    bad = bad | (raw[..., col_names["Pab1"]] > 89)
    bad = bad | (raw[..., col_names["Pab2"]] > 89)
    bad = bad | (raw[..., col_names["Pab3"]] > 89)
    wdir = raw[..., col_names["Wdir"]]
    bad = bad | (wdir < -180) | (wdir > 180)
    ndir = raw[..., col_names["Ndir"]]
    bad = bad | (ndir < -720) | (ndir > 720)
    bad = bad | ((patv == 0) & (raw[..., col_names["Wspd"]] > 2.5))
    return jnp.where(bad, jnp.float32(0), jnp.float32(1))      # (B, N, T) f32


def _reference_loss(pred, gold, raw, col_names):
    """Pure-JAX transcription of the PyTorch forward (verification / bypass)."""
    cond = _compute_cond(raw, col_names)
    se = (pred - gold) ** 2 * cond
    ae = jnp.abs(pred - gold) * cond
    _mse = jnp.sum(jnp.mean(se, axis=2), axis=1)
    _mae = jnp.sum(jnp.mean(ae, axis=2), axis=1)
    _mse = jnp.sort(_mse)[::-1]
    _mae = jnp.sort(_mae)[::-1]
    top_l = pred.shape[0]  # int(len(pred) * 1)
    return jnp.mean(_mse[:top_l]) + jnp.mean(_mae[:top_l])


def filter_mse_loss(pred, gold, raw, col_names, *, lane=None, tm=None,
                    force_pallas=False, small_input_threshold=8192):
    """pred/gold: (B, N, T); raw: (B, N, T, C) -> scalar loss (f32)."""
    B, N, T = pred.shape
    E = B * N * T

    # Small-input bypass: launch + single-step pipeline overhead dominates.
    if (not force_pallas) and E < small_input_threshold:
        return _reference_loss(pred, gold, raw, col_names)

    # One fused pass over raw -> lane-dense 0/1 cond plane (review item #1).
    cond = _compute_cond(raw, col_names)

    # Lane selection: largest multiple of 128 dividing E -> the flat reshape
    # is a free bitcast and no pad materialization is needed (review item #2).
    if lane is None:
        lane = next((c for c in (1024, 512, 256, 128) if E % c == 0), 128)
    assert lane % 128 == 0
    pad = (-E) % lane                 # only nonzero when E % 128 != 0
    rows = (E + pad) // lane

    def _flat(x):
        x = x.astype(jnp.float32).reshape(E)
        if pad:
            # cond pads with 0 -> padded elements contribute exactly zero.
            x = jnp.pad(x, (0, pad))
        return x.reshape(rows, lane)

    pred2, gold2, cond2 = _flat(pred), _flat(gold), _flat(cond)

    # Row tile: multiple of 8, block ~<= 6 MiB (3 f32 planes); prefer grid>=2
    # so the "parallel" axis can split across TensorCores.
    if tm is None:
        target_elems = 512 * 1024
        tm_cap = max(8, (target_elems // lane) // 8 * 8)
        half = (rows + 1) // 2
        tm = max(8, min(tm_cap, ((half + 7) // 8) * 8))
    assert tm % 8 == 0
    grid = pl.cdiv(rows, tm)
    needs_mask = (grid * tm != rows)   # ragged last block -> mask in kernel

    kernel = functools.partial(_filter_loss_kernel,
                               rows_valid=rows, needs_mask=needs_mask)

    # Generation-aware VMEM cap (v7x has 64 MiB/TC; v5e/v6e have 128 MiB).
    in_block_bytes = 3 * 4 * tm * lane
    out_block_bytes = 4 * 8 * lane
    need = 2 * (in_block_bytes + out_block_bytes)      # double-buffered
    try:
        vmem_cap = pltpu.get_tpu_info().vmem_capacity_bytes
    except Exception:
        vmem_cap = 64 * 2**20
    vmem_limit = int(min(0.75 * vmem_cap, max(need + (4 << 20), 16 << 20)))

    cost = pl.CostEstimate(
        flops=8 * rows * lane,
        transcendentals=0,
        bytes_accessed=3 * 4 * rows * lane + grid * out_block_bytes,
    )

    partials = pl.pallas_call(
        kernel,
        out_shape=jax.ShapeDtypeStruct((grid, 8, lane), jnp.float32),
        grid_spec=pltpu.PrefetchScalarGridSpec(
            num_scalar_prefetch=0,
            grid=(grid,),
            in_specs=[
                pl.BlockSpec((tm, lane), lambda i: (i, 0)),
                pl.BlockSpec((tm, lane), lambda i: (i, 0)),
                pl.BlockSpec((tm, lane), lambda i: (i, 0)),
            ],
            out_specs=pl.BlockSpec((1, 8, lane), lambda i: (i, 0, 0)),
        ),
        compiler_params=pltpu.CompilerParams(
            dimension_semantics=("parallel",),
            vmem_limit_bytes=vmem_limit,
        ),
        cost_estimate=cost,
    )(pred2, gold2, cond2)

    # mean over T, sum over N, mean over B for both mse and mae collapses to
    # total / (T * B); masked / padded tails contribute exactly zero.
    return jnp.sum(partials) / jnp.float32(T * B)


def _make_inputs(key, B, N, T):
    C = len(COL_NAMES)
    ks = jax.random.split(key, 8)
    pred = jax.random.normal(ks[0], (B, N, T), dtype=jnp.float32)
    gold = jax.random.normal(ks[1], (B, N, T), dtype=jnp.float32)
    raw = jax.random.normal(ks[2], (B, N, T, C), dtype=jnp.float32)
    # Make the filtered conditions actually trigger on some entries.
    raw = raw.at[..., COL_NAMES["Patv"]].set(
        jax.random.uniform(ks[3], (B, N, T), minval=-5.0, maxval=50.0))
    raw = raw.at[..., COL_NAMES["Pab1"]].set(
        jax.random.uniform(ks[4], (B, N, T), minval=0.0, maxval=95.0))
    raw = raw.at[..., COL_NAMES["Wdir"]].set(
        jax.random.uniform(ks[5], (B, N, T), minval=-200.0, maxval=200.0))
    raw = raw.at[..., COL_NAMES["Ndir"]].set(
        jax.random.uniform(ks[6], (B, N, T), minval=-800.0, maxval=800.0))
    raw = raw.at[..., COL_NAMES["Wspd"]].set(
        jnp.abs(raw[..., COL_NAMES["Wspd"]]) * 5.0)
    return pred, gold, raw


if __name__ == "__main__":
    key = jax.random.PRNGKey(0)
    k1, k2, k3 = jax.random.split(key, 3)

    # Case 1: tiny demo shape (B=2, N=8, T=16); force the Pallas path so the
    # kernel is actually exercised (E divides lane -> no pad, single block).
    pred, gold, raw = _make_inputs(k1, 2, 8, 16)
    loss = jax.block_until_ready(
        filter_mse_loss(pred, gold, raw, COL_NAMES, force_pallas=True))
    ref = _reference_loss(pred, gold, raw, COL_NAMES)
    assert jnp.allclose(loss, ref, rtol=1e-5, atol=1e-5), (loss, ref)

    # Case 2: day-sequence horizon (T=288); auto path, lane=512, grid=2 with
    # a ragged last block -> exercises the in-kernel row mask, no pads.
    pred, gold, raw = _make_inputs(k2, 2, 24, 288)
    loss = jax.block_until_ready(filter_mse_loss(pred, gold, raw, COL_NAMES))
    ref = _reference_loss(pred, gold, raw, COL_NAMES)
    assert jnp.allclose(loss, ref, rtol=1e-5, atol=1e-5), (loss, ref)

    # Case 3: E not divisible by 128 -> small pad fallback path.
    pred, gold, raw = _make_inputs(k3, 2, 9, 50)
    loss = jax.block_until_ready(
        filter_mse_loss(pred, gold, raw, COL_NAMES, force_pallas=True))
    ref = _reference_loss(pred, gold, raw, COL_NAMES)
    assert jnp.allclose(loss, ref, rtol=1e-5, atol=1e-5), (loss, ref)

    print("KERNEL_OK")
</pallas_src>

<mosaic_0001>
module attributes {stable_mosaic.version = 11 : i64} {
  func.func @_filter_loss_kernel(%arg0: i32, %arg1: memref<8x256xf32, #tpu.memory_space<vmem>>, %arg2: memref<8x256xf32, #tpu.memory_space<vmem>>, %arg3: memref<8x256xf32, #tpu.memory_space<vmem>>, %arg4: memref<1x8x256xf32, #tpu.memory_space<vmem>>) attributes {dimension_semantics = [#tpu.dimension_semantics<parallel>], iteration_bounds = array<i64: 1>, scalar_prefetch = 0 : i64, scratch_operands = 0 : i64, tpu.core_type = #tpu.core_type<tc>, window_params = [{transform_indices = @transform_0, window_bounds = array<i64: 8, 256>}, {transform_indices = @transform_1, window_bounds = array<i64: 8, 256>}, {transform_indices = @transform_2, window_bounds = array<i64: 8, 256>}, {transform_indices = @transform_3, window_bounds = array<i64: 1, 8, 256>}]} {
    %c0 = arith.constant 0 : index
    %c0_0 = arith.constant 0 : index
    %0 = vector.load %arg1[%c0, %c0_0] : memref<8x256xf32, #tpu.memory_space<vmem>>, vector<8x256xf32>
    %c0_1 = arith.constant 0 : index
    %c0_2 = arith.constant 0 : index
    %1 = vector.load %arg2[%c0_1, %c0_2] : memref<8x256xf32, #tpu.memory_space<vmem>>, vector<8x256xf32>
    %2 = arith.subf %0, %1 : vector<8x256xf32>
    %3 = arith.mulf %2, %2 : vector<8x256xf32>
    %4 = math.absf %2 : vector<8x256xf32>
    %5 = arith.addf %3, %4 : vector<8x256xf32>
    %c0_3 = arith.constant 0 : index
    %c0_4 = arith.constant 0 : index
    %6 = vector.load %arg3[%c0_3, %c0_4] : memref<8x256xf32, #tpu.memory_space<vmem>>, vector<8x256xf32>
    %7 = arith.mulf %5, %6 : vector<8x256xf32>
    %8 = tpu.iota {dimensions = array<i32: 0>} : vector<8x256xi32>
    %c8_i32 = arith.constant 8 : i32
    %9 = arith.muli %arg0, %c8_i32 : i32
    %10 = vector.broadcast %9 : i32 to vector<8x256xi32>
    %11 = arith.addi %10, %8 : vector<8x256xi32>
    %c1_i32 = arith.constant 1 : i32
    %12 = vector.broadcast %c1_i32 : i32 to vector<8x256xi32>
    %13 = arith.cmpi slt, %11, %12 : vector<8x256xi32>
    %cst = arith.constant 0.000000e+00 : f32
    %14 = vector.broadcast %cst : f32 to vector<8x256xf32>
    %15 = arith.select %13, %7, %14 : vector<8x256xi1>, vector<8x256xf32>
    %16 = vector.shape_cast %15 : vector<8x256xf32> to vector<1x8x256xf32>
    %cst_5 = arith.constant dense<0.000000e+00> : vector<8x256xf32>
    %17 = vector.multi_reduction <add>, %16, %cst_5 [0] : vector<1x8x256xf32> to vector<8x256xf32>
    %18 = vector.shape_cast %17 : vector<8x256xf32> to vector<1x8x256xf32>
    %c0_6 = arith.constant 0 : index
    %c0_7 = arith.constant 0 : index
    %c0_8 = arith.constant 0 : index
    %19 = vector.load %arg4[%c0_6, %c0_7, %c0_8] : memref<1x8x256xf32, #tpu.memory_space<vmem>>, vector<1x8x256xf32>
    tpu.vector_store %arg4[%c0_6, %c0_7, %c0_8], %18 {strides = array<i32>} : memref<1x8x256xf32, #tpu.memory_space<vmem>>, vector<1x8x256xf32>,
    return
  }
  func.func @transform_0(%arg0: i32) -> (i32, i32) {
    %c0_i32 = arith.constant 0 : i32
    %c0_i32_0 = arith.constant 0 : i32
    return %arg0, %c0_i32 : i32, i32
  }
  func.func @transform_1(%arg0: i32) -> (i32, i32) {
    %c0_i32 = arith.constant 0 : i32
    %c0_i32_0 = arith.constant 0 : i32
    return %arg0, %c0_i32 : i32, i32
  }
  func.func @transform_2(%arg0: i32) -> (i32, i32) {
    %c0_i32 = arith.constant 0 : i32
    %c0_i32_0 = arith.constant 0 : i32
    return %arg0, %c0_i32 : i32, i32
  }
  func.func @transform_3(%arg0: i32) -> (i32, i32, i32) {
    %c0_i32 = arith.constant 0 : i32
    %c0_i32_0 = arith.constant 0 : i32
    %c0_i32_1 = arith.constant 0 : i32
    return %arg0, %c0_i32, %c0_i32_0 : i32, i32, i32
  }
}

</mosaic_0001>

<bundles_post_ra>
// kernel: tpu_custom_call.1
= control target key start
LH: loop header
LB: loop body
LE: loop exit
PB: predicated region body
PF: predicated region fallthrough
CT: control target
= control target key end

     0   :  { %8 = vsyncpa [#allocation3], 0  ;;  %s350_s0 = inlined_call_operand.hbm [shape: f32[1,256], index: 0, kind: input, shape index: {}]   ;;  %s351_s1 = inlined_call_operand.vmem [shape: f32[1,256], index: 1, kind: input, shape index: {}]   ;;  %s352_s2 = inlined_call_operand.vmem [shape: f32[1,256], index: 2, kind: input, shape index: {}]   ;;  %s353_s3 = inlined_call_operand.hbm [shape: f32[1,8,256], index: 3, kind: output, shape index: {}]  }
   0x1   :  { %9 = vsyncpa [#allocation4], 0 }
   0x2   :  { %14 = vsyncadd [#allocation3], 224  ;;  %s249_s12 = smov [#allocation2]   ;;  %s201_s16 = scalar_lea.hbm %s350_s0, 32 }
   0x3   :  { %s15_s13 = sshll.u32 %s249_s12, 4  ;;  %p202_p0 = scmp.ne.s32.totalorder %s350_s0, %s201_s16  ;;  %s16_s13 = int_to_ptr.vmem [resolvable:$true] %s15_s13 }
   0x4   :  { %p205_p1 = scmp.lt.u32.totalorder %s201_s16, %s350_s0 }
   0x6   :  { %p207_p2 = pnand %p205_p1, %p202_p0 }
   0x8   :  { %210 = shalt.err (!%p207_p2)
}
   0x9   :  { %s211_s21 = scalar_lea.vmem %s16_s13, 32  ;;  %s215_s22 = scalar_lea.vmem %s16_s13, 256 }
   0xa   :  { %p212_p3 = scmp.ne.s32.totalorder %s16_s13, %s211_s21  ;;  %p216_p4 = scmp.lt.s32.totalorder %s16_s13, %s16_s13 }
   0xb   :  { %p217_p5 = scmp.lt.s32.totalorder %s215_s22, %s211_s21 }
   0xd   :  { %p218_p6 = por %p217_p5, %p216_p4 }
   0xf   :  { %p219_p7 = pnand %p218_p6, %p212_p3 }
  0x11   :  { %222 = shalt.err (!%p219_p7)
}
  0x12   :  { %s250_s23 = smov 32   ;;  %s251_s24 = smov 2  }
  0x13   :  { %21 = dma.hbm_to_vmem [thread:$0]  %s350_s0, 32, %s16_s13, [#allocation3], %s250_s23, %s250_s23, %s251_s24  }
  0x14   :  { %245 = dma.done.wait [#allocation3], 256  }
  0x15   :  { %246 = vsyncadd [#allocation3], 4294967040  ;;  %v93_v0 = vlaneseq  ;;  %v252_v1 = vmov 1966171168   ;;  %v29_v4 = vld [vmem:[#allocation2] sm:$0x3] }
  0x16   :  { %v112_v2 = vunpack.c.l.s4 %v252_v1  ;;  %v30_v5 = vld [vmem:[#allocation2 + $0x2] sm:$0x3]  ;;  %v31_v6 = vld [vmem:[#allocation2 + $0x4] sm:$0x3]  ;;  %v32_v8 = vld [vmem:[#allocation2 + $0x6] sm:$0x3] }
  0x17   :  { %v286_v3 = vshrl.u32 %v93_v0, 7  ;;  %v33_v9 = vld [vmem:[#allocation2 + $0x8] sm:$0x3]  ;;  %v34_v10 = vld [vmem:[#allocation2 + $0xa] sm:$0x3] }
  0x18   :  { %v113_v7 = vunpack.c.0.s8 %v112_v2  ;;  %v35_v11 = vld [vmem:[#allocation2 + $0xc] sm:$0x3]  ;;  %v36_v12 = vld [vmem:[#allocation2 + $0xe] sm:$0x3]  ;;  %v37_v13 = vld [vmem:[%s351_s1] sm:$0x3] }
  0x19   :  { %v38_v14 = vld [vmem:[%s351_s1 + $0x2] sm:$0x3]  ;;  %v39_v15 = vld [vmem:[%s351_s1 + $0x4] sm:$0x3]  ;;  %v40_v16 = vld [vmem:[%s351_s1 + $0x6] sm:$0x3]  ;;  %v45_v17 = vsub.f32 %v29_v4, %v37_v13 }
  0x1a   :  { %v41_v18 = vld [vmem:[%s351_s1 + $0x8] sm:$0x3]  ;;  %v42_v19 = vld [vmem:[%s351_s1 + $0xa] sm:$0x3]  ;;  %v43_v20 = vld [vmem:[%s351_s1 + $0xc] sm:$0x3]  ;;  %v46_v21 = vsub.f32 %v30_v5, %v38_v14  ;;  %v47_v22 = vsub.f32 %v31_v6, %v39_v15  ;;  %v48_v23 = vsub.f32 %v32_v8, %v40_v16  ;;  %v116_v24 = vsub.s32 %v113_v7, %v286_v3 }
  0x1b   :  { %v44_v25 = vld [vmem:[%s351_s1 + $0xe] sm:$0x3]  ;;  %v49_v26 = vsub.f32 %v33_v9, %v41_v18  ;;  %v50_v27 = vsub.f32 %v34_v10, %v42_v19  ;;  %v51_v28 = vsub.f32 %v35_v11, %v43_v20  ;;  %v53_v29 = vmul.f32 %v45_v17, %v45_v17  ;;  %v77_v34 = vld [vmem:[%s352_s2] sm:$0x3]  ;;  %v78_v39 = vld [vmem:[%s352_s2 + $0x2] sm:$0x3] }
  0x1c   :  { %v52_v30 = vsub.f32 %v36_v12, %v44_v25  ;;  %v54_v31 = vmul.f32 %v46_v21, %v46_v21  ;;  %v55_v32 = vmul.f32 %v47_v22, %v47_v22  ;;  %v56_v33 = vmul.f32 %v48_v23, %v48_v23  ;;  %v79_v40 = vld [vmem:[%s352_s2 + $0x4] sm:$0x3]  ;;  %v80_v41 = vld [vmem:[%s352_s2 + $0x6] sm:$0x3]  ;;  %v81_v46 = vld [vmem:[%s352_s2 + $0x8] sm:$0x3] }
  0x1d   :  { %v57_v35 = vmul.f32 %v49_v26, %v49_v26  ;;  %v58_v36 = vmul.f32 %v50_v27, %v50_v27  ;;  %v59_v37 = vmul.f32 %v51_v28, %v51_v28  ;;  %v61_v38 = vand.u32 2147483647, %v45_v17  ;;  %v82_v55 = vld [vmem:[%s352_s2 + $0xa] sm:$0x3]  ;;  %v83_v56 = vld [vmem:[%s352_s2 + $0xc] sm:$0x3] }
  0x1e   :  { %v60_v42 = vmul.f32 %v52_v30, %v52_v30  ;;  %v62_v43 = vand.u32 2147483647, %v46_v21  ;;  %v63_v44 = vand.u32 2147483647, %v47_v22  ;;  %v64_v45 = vand.u32 2147483647, %v48_v23 }
  0x1f   :  { %v65_v47 = vand.u32 2147483647, %v49_v26  ;;  %v66_v48 = vand.u32 2147483647, %v50_v27  ;;  %v67_v49 = vand.u32 2147483647, %v51_v28  ;;  %v69_v50 = vadd.f32 %v61_v38, %v53_v29 }
  0x20   :  { %v68_v51 = vand.u32 2147483647, %v52_v30  ;;  %v70_v52 = vadd.f32 %v62_v43, %v54_v31  ;;  %v71_v53 = vadd.f32 %v63_v44, %v55_v32  ;;  %v72_v54 = vadd.f32 %v64_v45, %v56_v33  ;;  %v84_v60 = vld [vmem:[%s352_s2 + $0xe] sm:$0x3]  ;;  %s253_s2 = smov [#allocation5]  }
  0x21   :  { %v73_v57 = vadd.f32 %v65_v47, %v57_v35  ;;  %v74_v58 = vadd.f32 %v66_v48, %v58_v36  ;;  %v75_v59 = vadd.f32 %v67_v49, %v59_v37  ;;  %v85_v61 = vmul.f32 %v77_v34, %v69_v50  ;;  %s187_s29 = sshll.u32 %s253_s2, 4  ;;  %s188_s29 = int_to_ptr.vmem [resolvable:$true] %s187_s29 }
  0x22   :  { %v76_v62 = vadd.f32 %v68_v51, %v60_v42  ;;  %v86_v63 = vmul.f32 %v78_v39, %v70_v52  ;;  %v87_v0 = vmul.f32 %v79_v40, %v71_v53  ;;  %v88_v1 = vmul.f32 %v80_v41, %v72_v54  ;;  %s223_s30 = scalar_lea.vmem %s188_s29, 256  ;;  %p228_p9 = scmp.lt.s32.totalorder %s188_s29, %s188_s29 }
  0x23   :  { %v89_v2 = vmul.f32 %v81_v46, %v73_v57  ;;  %v90_v4 = vmul.f32 %v82_v55, %v74_v58  ;;  %v91_v5 = vmul.f32 %v83_v56, %v75_v59  ;;  %vm98_vm0 = vcmp.lt.s32.totalorder %v286_v3, 1  ;;  %p224_p8 = scmp.ne.s32.totalorder %s188_s29, %s223_s30  ;;  %p229_p10 = scmp.lt.s32.totalorder %s223_s30, %s223_s30 }
  0x24   :  { %v92_v6 = vmul.f32 %v84_v60, %v76_v62  ;;  %v107_v7 = vcombine.low %v85_v61, %v86_v63  ;;  %v108_v8 = vcombine.low %v87_v0, %v88_v1 }
  0x25   :  { %v109_v9 = vcombine.low %v89_v2, %v90_v4  ;;  %p230_p11 = por %p229_p10, %p228_p9 }
  0x26   :  { %v110_v10 = vcombine.low %v91_v5, %v92_v6  ;;  %v117_v11 = vrot.slane %v107_v7, %v116_v24  ;;  %v124_v12 = vrot.slane %v108_v8, %v116_v24 }
  0x27   :  { %v131_v13 = vrot.slane %v109_v9, %v116_v24  ;;  %p231_p12 = pnand %p230_p11, %p224_p8 }
  0x28   :  { %v138_v14 = vrot.slane %v110_v10, %v116_v24  ;;  %v139_v15 = vcombine.low %v117_v11, %v124_v12  ;;  %v140_v16 = vcombine.high %v117_v11, %v124_v12 }
  0x2a   :  { %v141_v17 = vcombine.low %v131_v13, %v138_v14  ;;  %v149_v18 = vrot.slane %v139_v15, %v116_v24  ;;  %v142_v19 = vcombine.high %v131_v13, %v138_v14  ;;  %v156_v20 = vrot.slane %v140_v16, %v116_v24 }
  0x2c   :  { %v163_v21 = vrot.slane %v141_v17, %v116_v24  ;;  %v170_v22 = vrot.slane %v142_v19, %v116_v24 }
  0x2e   :  { %v171_v23 = vcombine.low %v149_v18, %v163_v21  ;;  %v172_v25 = vcombine.low %v156_v20, %v170_v22 }
  0x30   :  { %v175_v26 = vsel %vm98_vm0, %v171_v23, 0.0  ;;  %v176_v27 = vsel %vm98_vm0, %v172_v25, 0.0 }
  0x31   :  { %179 = vst [vmem:[#allocation5] sm:$0xff] %v175_v26  ;;  %180 = vst [vmem:[#allocation5 + $0x8] sm:$0xff] %v176_v27 }
  0x32   :  { %234 = shalt.err (!%p231_p12)
}
  0x33   :  { %s235_s6 = scalar_lea.hbm %s353_s3, 256 }
  0x34   :  { %p236_p13 = scmp.ne.s32.totalorder %s353_s3, %s235_s6  ;;  %p239_p0 = scmp.lt.u32.totalorder %s235_s6, %s353_s3 }
  0x36   :  { %p241_p1 = pnand %p239_p0, %p236_p13 }
  0x38   :  { %244 = shalt.err (!%p241_p1)
}
  0x39   :  { %190 = dma.vmem_to_hbm [thread:$0]  %s188_s29, 256, %s353_s3, [#allocation4]  }
  0x3a   :  { %247 = dma.done.wait [#allocation4], 256  }
  0x3b   :  { %248 = vsyncadd [#allocation4], 4294967040 }
  0x3c   :  { %194 = vsyncpa [#allocation3], 1 }
  0x3d   :  { %195 = vsyncpa [#allocation4], 1 }

</bundles_post_ra>
